<compile_context>
chip_gen: v6e
topology: v6e:2x2x1
jax: 0.10.0
libtpu: 0.0.40
codegen_flags: <defaults>
</compile_context>

<pallas_src>
import jax
import jax.numpy as jnp
from jax import lax
from jax.experimental import pallas as pl
from jax.experimental.pallas import tpu as pltpu

_LANE = 128
_TN_CEILING = 16384  # explicit VMEM-aware tile ceiling (v7x: 32 MiB scoped default)


def _num_tensorcores():
    """2 for chips that shard a 'parallel' grid axis across TensorCores."""
    try:
        kind = jax.devices()[0].device_kind.lower()
    except Exception:
        return 1
    if "v7" in kind or "tpu7" in kind or "v4" in kind or "v5p" in kind:
        return 2
    return 1


def _make_mlp_kernel(d_in, d_out, h):
    """Kernel body, specialized on the (degenerate) layer shapes.

    Packed parameter slab columns: [ W1^T | b1 | b2 | W3 | b3 ]
    (b3 occupies the first d_out rows of its column).
    """
    c_w1 = 0
    c_b1 = d_in
    c_b2 = d_in + 1
    c_w3 = d_in + 2
    c_b3 = d_in + 2 + d_out

    def kernel(xt_ref, p_ref, w2t_ref, o_ref):
        xt = xt_ref[...]                       # (d_in, tn)  batch on lanes
        p = p_ref[...]                         # (h, d_in + d_out + 3)
        w1t = p[:, c_w1:c_w1 + d_in]           # (h, d_in)
        b1 = p[:, c_b1:c_b1 + 1]               # (h, 1)
        b2 = p[:, c_b2:c_b2 + 1]               # (h, 1)
        w3 = p[:, c_w3:c_w3 + d_out]           # (h, d_out)
        b3 = p[:d_out, c_b3:c_b3 + 1]          # (d_out, 1)

        if d_in == 1:
            # Layer 1 with K == 1: pure VPU outer product (h,1)*(1,tn) -> (h,tn)
            z1 = w1t * xt + b1
        else:
            z1 = lax.dot_general(
                w1t, xt, (((1,), (0,)), ((), ())),
                preferred_element_type=jnp.float32) + b1
        h1 = jnp.tanh(z1)                      # (h, tn)  -- EUP

        # Layer 2: the only real matmul (h x h) -- MXU, f32 accumulate.
        z2 = jnp.dot(w2t_ref[...], h1, preferred_element_type=jnp.float32) + b2
        h2 = jnp.tanh(z2)                      # (h, tn)  -- EUP

        if d_out == 1:
            # Layer 3 with N == 1: VPU multiply + sublane (XLU) reduce -> (1, tn)
            o_ref[...] = jnp.sum(w3 * h2, axis=0, keepdims=True) + b3
        else:
            o_ref[...] = lax.dot_general(
                w3, h2, (((0,), (0,)), ((), ())),
                preferred_element_type=jnp.float32) + b3

    return kernel


def net_forward(x, params, *, tn=None):
    """3-layer MLP forward pass as one Pallas kernel.

    x: (N, D_in) float32 (any N; the ragged last lane-block is handled by
       Pallas with masked writes -- no host-side padding).
    params: dict with w1 (D_in,H), b1 (1,H), w2 (H,H), b2 (1,H),
            w3 (H,D_out), b3 (1,D_out)   -- (in, out) layout vs. nn.Linear.
    """
    N, d_in = x.shape
    h = params["w1"].shape[1]
    d_out = params["w3"].shape[1]
    assert d_out <= h, "packed-parameter layout assumes d_out <= hidden"

    # Batch on the lane axis.  For d_in == 1 the transpose of an (N,1)
    # row-major array is a free reshape (identical data layout).
    xt = x.reshape(1, N) if d_in == 1 else x.T          # (d_in, N)

    # Pack the five tiny parameter tensors into one (h, d_in+d_out+3) slab:
    # one DMA instead of five, one double-buffered pipeline buffer.
    b3_col = jnp.pad(params["b3"].T, ((0, h - d_out), (0, 0)))  # (h, 1)
    packed = jnp.concatenate(
        [params["w1"].T, params["b1"].T, params["b2"].T, params["w3"], b3_col],
        axis=1).astype(jnp.float32)                     # (h, d_in + d_out + 3)
    w2t = params["w2"].T.astype(jnp.float32)            # (h, h)
    n_cols = d_in + d_out + 3

    if tn is None:
        n_lane = pl.cdiv(N, _LANE) * _LANE
        num_tc = _num_tensorcores()
        if num_tc > 1 and n_lane > 1024:
            # exactly `num_tc` balanced lane tiles, one per TensorCore (v7x)
            tn = pl.cdiv(pl.cdiv(n_lane, num_tc), _LANE) * _LANE
        else:
            # single lane-dense block: per-grid-step overhead (~0.35us) dominates
            # this workload on single-TC chips (v5e/v6e)
            tn = n_lane
        # keep intermediates + double-buffered tiles under the scoped-VMEM
        # default on every generation (v7x: 32 MiB scoped / 64 MiB physical)
        tn = min(tn, _TN_CEILING)
    assert tn % _LANE == 0

    grid = (pl.cdiv(N, tn),)

    out_t = pl.pallas_call(
        _make_mlp_kernel(d_in, d_out, h),
        out_shape=jax.ShapeDtypeStruct((d_out, N), jnp.float32),
        grid_spec=pltpu.PrefetchScalarGridSpec(
            num_scalar_prefetch=0,
            grid=grid,
            in_specs=[
                pl.BlockSpec((d_in, tn), lambda i: (0, i)),     # x^T lane tile
                pl.BlockSpec((h, n_cols), lambda i: (0, 0)),    # packed params
                pl.BlockSpec((h, h), lambda i: (0, 0)),         # W2^T
            ],
            out_specs=pl.BlockSpec((d_out, tn), lambda i: (0, i)),
        ),
        compiler_params=pltpu.CompilerParams(
            dimension_semantics=("parallel",),
        ),
    )(xt, packed, w2t)

    # back to (N, D_out) row-major; for d_out == 1 this is a free reshape
    return out_t.reshape(N, 1) if d_out == 1 else out_t.T


def init_params(key, n_input, n_hidden, n_output):
    """PyTorch-Linear-style init: U(-1/sqrt(fan_in), 1/sqrt(fan_in))."""
    ks = jax.random.split(key, 6)

    def linear(kw, kb, fan_in, fan_out):
        bound = 1.0 / jnp.sqrt(jnp.float32(fan_in))
        w = jax.random.uniform(kw, (fan_in, fan_out), jnp.float32, -bound, bound)
        b = jax.random.uniform(kb, (1, fan_out), jnp.float32, -bound, bound)
        return w, b

    w1, b1 = linear(ks[0], ks[1], n_input, n_hidden)
    w2, b2 = linear(ks[2], ks[3], n_hidden, n_hidden)
    w3, b3 = linear(ks[4], ks[5], n_hidden, n_output)
    return {"w1": w1, "b1": b1, "w2": w2, "b2": b2, "w3": w3, "b3": b3}


def net_forward_ref(x, p):
    h1 = jnp.tanh(x @ p["w1"] + p["b1"])
    h2 = jnp.tanh(h1 @ p["w2"] + p["b2"])
    return h2 @ p["w3"] + p["b3"]


if __name__ == "__main__":
    key = jax.random.PRNGKey(0)
    k_x, k_p = jax.random.split(key)

    D_in, H, D_out = 1, 32, 1
    N = 256  # small batch for the check (original script uses 3000)

    x = jax.random.uniform(k_x, (N, D_in), jnp.float32, -30.0, 30.0)
    params = init_params(k_p, D_in, H, D_out)

    # default path (single lane-dense block on v5e/v6e)
    out = jax.block_until_ready(net_forward(x, params))
    ref = net_forward_ref(x, params)
    assert out.shape == (N, D_out)
    assert jnp.allclose(out, ref, atol=2e-5, rtol=1e-5), "mismatch vs JAX reference"

    # also exercise the multi-step grid + ragged last block (masked writeback)
    x2 = jax.random.uniform(k_x, (300, D_in), jnp.float32, -30.0, 30.0)
    out2 = jax.block_until_ready(net_forward(x2, params, tn=128))
    ref2 = net_forward_ref(x2, params)
    assert out2.shape == (300, D_out)
    assert jnp.allclose(out2, ref2, atol=2e-5, rtol=1e-5), "ragged-block mismatch"

    print("KERNEL_OK")
</pallas_src>

<mosaic_0001>
module attributes {stable_mosaic.version = 11 : i64} {
  func.func @kernel(%arg0: i32, %arg1: memref<1x256xf32, #tpu.memory_space<vmem>>, %arg2: memref<32x5xf32, #tpu.memory_space<vmem>>, %arg3: memref<32x32xf32, #tpu.memory_space<vmem>>, %arg4: memref<1x256xf32, #tpu.memory_space<vmem>>) attributes {dimension_semantics = [#tpu.dimension_semantics<parallel>], iteration_bounds = array<i64: 1>, scalar_prefetch = 0 : i64, scratch_operands = 0 : i64, tpu.core_type = #tpu.core_type<tc>, window_params = [{transform_indices = @transform_0, window_bounds = array<i64: 1, 256>}, {pipeline_mode = #tpu.pipeline_mode<synchronous>, transform_indices = @transform_1, window_bounds = array<i64: 32, 5>}, {pipeline_mode = #tpu.pipeline_mode<synchronous>, transform_indices = @transform_2, window_bounds = array<i64: 32, 32>}, {transform_indices = @transform_3, window_bounds = array<i64: 1, 256>}]} {
    %c0 = arith.constant 0 : index
    %c0_0 = arith.constant 0 : index
    %0 = vector.load %arg1[%c0, %c0_0] : memref<1x256xf32, #tpu.memory_space<vmem>>, vector<1x256xf32>
    %c0_1 = arith.constant 0 : index
    %c0_2 = arith.constant 0 : index
    %1 = vector.load %arg2[%c0_1, %c0_2] : memref<32x5xf32, #tpu.memory_space<vmem>>, vector<32x5xf32>
    %2 = vector.extract_strided_slice %1 {offsets = [0, 0], sizes = [32, 1], strides = [1, 1]} : vector<32x5xf32> to vector<32x1xf32>
    %3 = vector.extract_strided_slice %1 {offsets = [0, 1], sizes = [32, 1], strides = [1, 1]} : vector<32x5xf32> to vector<32x1xf32>
    %4 = vector.extract_strided_slice %1 {offsets = [0, 2], sizes = [32, 1], strides = [1, 1]} : vector<32x5xf32> to vector<32x1xf32>
    %5 = vector.extract_strided_slice %1 {offsets = [0, 3], sizes = [32, 1], strides = [1, 1]} : vector<32x5xf32> to vector<32x1xf32>
    %6 = vector.extract_strided_slice %1 {offsets = [0, 4], sizes = [1, 1], strides = [1, 1]} : vector<32x5xf32> to vector<1x1xf32>
    %7 = vector.broadcast %2 : vector<32x1xf32> to vector<32x256xf32>
    %8 = vector.broadcast %0 : vector<1x256xf32> to vector<32x256xf32>
    %9 = arith.mulf %7, %8 : vector<32x256xf32>
    %10 = vector.broadcast %3 : vector<32x1xf32> to vector<32x256xf32>
    %11 = arith.addf %9, %10 : vector<32x256xf32>
    %12 = math.tanh %11 : vector<32x256xf32>
    %c0_3 = arith.constant 0 : index
    %c0_4 = arith.constant 0 : index
    %13 = vector.load %arg3[%c0_3, %c0_4] : memref<32x32xf32, #tpu.memory_space<vmem>>, vector<32x32xf32>
    %cst = arith.constant dense<0.000000e+00> : vector<32x256xf32>
    %14 = tpu.matmul %13, %12, %cst {dimension_numbers = #tpu.dot_dimension_numbers<[1], [0], [0], [1], [0, 0, 1, 1], [], []>} : vector<32x32xf32>, vector<32x256xf32>, vector<32x256xf32> -> vector<32x256xf32>
    %15 = vector.broadcast %4 : vector<32x1xf32> to vector<32x256xf32>
    %16 = arith.addf %14, %15 : vector<32x256xf32>
    %17 = math.tanh %16 : vector<32x256xf32>
    %18 = vector.broadcast %5 : vector<32x1xf32> to vector<32x256xf32>
    %19 = arith.mulf %18, %17 : vector<32x256xf32>
    %cst_5 = arith.constant dense<0.000000e+00> : vector<256xf32>
    %20 = vector.multi_reduction <add>, %19, %cst_5 [0] : vector<32x256xf32> to vector<256xf32>
    %21 = vector.shape_cast %20 : vector<256xf32> to vector<1x256xf32>
    %22 = vector.broadcast %6 : vector<1x1xf32> to vector<1x256xf32>
    %23 = arith.addf %21, %22 : vector<1x256xf32>
    %c0_6 = arith.constant 0 : index
    %c0_7 = arith.constant 0 : index
    %24 = vector.load %arg4[%c0_6, %c0_7] : memref<1x256xf32, #tpu.memory_space<vmem>>, vector<1x256xf32>
    tpu.vector_store %arg4[%c0_6, %c0_7], %23 {strides = array<i32>} : memref<1x256xf32, #tpu.memory_space<vmem>>, vector<1x256xf32>,
    return
  }
  func.func @transform_0(%arg0: i32) -> (i32, i32) {
    %c0_i32 = arith.constant 0 : i32
    %c0_i32_0 = arith.constant 0 : i32
    return %c0_i32, %arg0 : i32, i32
  }
  func.func @transform_1(%arg0: i32) -> (i32, i32) {
    %c0_i32 = arith.constant 0 : i32
    %c0_i32_0 = arith.constant 0 : i32
    %c0_i32_1 = arith.constant 0 : i32
    return %c0_i32, %c0_i32_0 : i32, i32
  }
  func.func @transform_2(%arg0: i32) -> (i32, i32) {
    %c0_i32 = arith.constant 0 : i32
    %c0_i32_0 = arith.constant 0 : i32
    %c0_i32_1 = arith.constant 0 : i32
    return %c0_i32, %c0_i32_0 : i32, i32
  }
  func.func @transform_3(%arg0: i32) -> (i32, i32) {
    %c0_i32 = arith.constant 0 : i32
    %c0_i32_0 = arith.constant 0 : i32
    return %c0_i32, %arg0 : i32, i32
  }
}

</mosaic_0001>

<bundles_post_ra>
// kernel: tpu_custom_call.1
= control target key start
LH: loop header
LB: loop body
LE: loop exit
PB: predicated region body
PF: predicated region fallthrough
CT: control target
= control target key end

     0   :  { %v391_v1 = vmov 1   ;;  %v392_v2 = vmov 0   ;;  %s460_s0 = inlined_call_operand.vmem [shape: f32[1,256], index: 0, kind: input, shape index: {}]   ;;  %s461_s1 = inlined_call_operand.vmem [shape: f32[32,5], index: 1, kind: input, shape index: {}]   ;;  %s462_s2 = inlined_call_operand.vmem [shape: f32[32,32], index: 2, kind: input, shape index: {}]   ;;  %s463_s3 = inlined_call_operand.hbm [shape: f32[1,256], index: 3, kind: output, shape index: {}]  }
   0x1   :  { %v19_v0 = vld [vmem:[%s461_s1 + $0x18] sm:$0xff]  ;;  %327 = vset.pattern.permute.xlu1 %v391_v1  ;;  %326 = vset.pattern.permute.xlu0 %v392_v2 }
   0x2   :  { %8 = vsyncpa [#allocation3], 0  ;;  %72 = vperm.xlu1 %327, %v19_v0   ;;  %37 = vperm.xlu0 %326, %v19_v0   ;;  %v18_v3 = vld [vmem:[%s461_s1 + $0x10] sm:$0xff]  ;;  %v17_v4 = vld [vmem:[%s461_s1 + $0x8] sm:$0xff]  ;;  %v393_v6 = vmov 0.0   ;;  %v394_v7 = vmov 2   ;;  %v41_v10 = vlaneseq }
   0x3   :  { %v16_v5 = vld [vmem:[%s461_s1] sm:$0xff]  ;;  %188 = vmatprep.mubr.f32.mxu0 %v393_v6  ;;  %200 = vmatprep.mubr.f32.mxu1 %v393_v6  ;;  %v395_v8 = vmov 3   ;;  %v396_v9 = vmov 4   ;;  %vm111_vm0 = vcmask 261120   ;;  %v93_v49 = vld [vmem:[%s462_s2 + $0x10] sm:$0xff]  ;;  %v92_v51 = vld [vmem:[%s462_s2 + $0x8] sm:$0xff] }
   0x4   :  { %v434_v11 = vshrl.u32 %v41_v10, 7  ;;  %v15_v14 = vld [vmem:[%s460_s0] sm:$0x3]  ;;  %v94_v52 = vld [vmem:[%s462_s2 + $0x18] sm:$0xff]  ;;  %vm289_vm1 = vcmp.lt.s32.totalorder %v41_v10, 256 }
   0x5   :  { %v91_v48 = vld [vmem:[%s462_s2] sm:$0xff]  ;;  %s398_s2 = smov [#allocation2]  }
   0x6   :  { %328 = vset.pattern.permute.xlu1 %v392_v2  ;;  %32 = vperm.xlu0 %326, %v18_v3   ;;  %v43_v12 = vsub.s32 0, %v434_v11  ;;  %v47_v13 = vsub.s32 1, %v434_v11  ;;  %s298_s28 = sshll.u32 %s398_s2, 4  ;;  %s299_s28 = int_to_ptr.vmem [resolvable:$true] %s298_s28 }
   0x7   :  { %27 = vperm.xlu1 %328, %v17_v4   ;;  %s369_s29 = scalar_lea.vmem %s299_s28, 32  ;;  %p374_p1 = scmp.lt.s32.totalorder %s299_s28, %s299_s28 }
   0x8   :  { %v44_v15 = vrot.slane %v15_v14, %v43_v12  ;;  %v48_v16 = vrot.slane %v15_v14, %v47_v13  ;;  %p370_p0 = scmp.ne.s32.totalorder %s299_s28, %s369_s29  ;;  %p375_p2 = scmp.lt.s32.totalorder %s369_s29, %s369_s29 }
   0xa   :  { %329 = vset.pattern.permute.xlu0 %v391_v1  ;;  %p376_p3 = por %p375_p2, %p374_p1 }
   0xb   :  { %68 = vperm.xlu0 %329, %v18_v3   ;;  %22 = vperm.xlu1 %328, %v16_v5  }
   0xc   :  { %p377_p4 = pnand %p376_p3, %p370_p0 }
   0xf   :  { %60 = vperm.xlu0 %329, %v16_v5   ;;  %330 = vset.pattern.permute.xlu1 %v391_v1 }
  0x10   :  { %64 = vperm.xlu1 %330, %v17_v4  }
  0x13   :  { %332 = vset.pattern.permute.xlu0 %v394_v7 }
  0x14   :  { %331 = vset.pattern.permute.xlu1 %v394_v7  ;;  %100 = vperm.xlu0 %332, %v17_v4  }
  0x15   :  { %96 = vperm.xlu1 %331, %v16_v5  }
  0x18   :  { %333 = vset.pattern.permute.xlu0 %v395_v8 }
  0x19   :  { %104 = vperm.xlu1 %331, %v18_v3   ;;  %222 = vperm.xlu0 %333, %v16_v5  }
  0x1d   :  { %108 = vperm.xlu1 %331, %v19_v0   ;;  %234 = vperm.xlu0 %333, %v19_v0  }
  0x21   :  { %334 = vset.pattern.permute.xlu1 %v395_v8  ;;  %336 = vset.pattern.permute.xlu0 %v396_v9 }
  0x22   :  { %226 = vperm.xlu1 %334, %v17_v4  }
  0x26   :  { %230 = vperm.xlu1 %334, %v18_v3  }
  0x2a   :  { %335 = vset.pattern.permute.xlu1 %v396_v9 }
  0x2b   :  { %264 = vperm.xlu1 %335, %v16_v5  }
  0x7d   :  { %v73_v17 = vpop.permute.xlu1 %72  ;;  %v38_v18 = vpop.permute.xlu0 %37 }
  0x7e   :  { %v57_v19 = vmul.f32 %v44_v15, %v38_v18  ;;  %v58_v20 = vmul.f32 %v48_v16, %v38_v18 }
  0x80   :  { %v81_v21 = vadd.f32 %v73_v17, %v57_v19  ;;  %v82_v22 = vadd.f32 %v73_v17, %v58_v20 }
  0x81   :  { %v33_v23 = vpop.permute.xlu0 %32 }
  0x82   :  { %337 = vtanh.f32 %v81_v21  ;;  %v28_v24 = vpop.permute.xlu1 %27  ;;  %v55_v25 = vmul.f32 %v44_v15, %v33_v23  ;;  %v56_v26 = vmul.f32 %v48_v16, %v33_v23 }
  0x83   :  { %339 = vtanh.f32 %v82_v22  ;;  %v53_v31 = vmul.f32 %v44_v15, %v28_v24  ;;  %v54_v32 = vmul.f32 %v48_v16, %v28_v24 }
  0x86   :  { %v69_v27 = vpop.permute.xlu0 %68  ;;  %v23_v28 = vpop.permute.xlu1 %22 }
  0x87   :  { %v79_v29 = vadd.f32 %v69_v27, %v55_v25  ;;  %v80_v30 = vadd.f32 %v69_v27, %v56_v26  ;;  %v52_v35 = vmul.f32 %v48_v16, %v23_v28  ;;  %v51_v38 = vmul.f32 %v44_v15, %v23_v28 }
  0x89   :  { %341 = vtanh.f32 %v79_v29 }
  0x8a   :  { %343 = vtanh.f32 %v80_v30  ;;  %v61_v33 = vpop.permute.xlu0 %60 }
  0x8b   :  { %v65_v34 = vpop.permute.xlu1 %64  ;;  %v76_v39 = vadd.f32 %v61_v33, %v52_v35  ;;  %v75_v41 = vadd.f32 %v61_v33, %v51_v38 }
  0x8c   :  { %v77_v36 = vadd.f32 %v65_v34, %v53_v31  ;;  %v78_v37 = vadd.f32 %v65_v34, %v54_v32 }
  0x8e   :  { %345 = vtanh.f32 %v77_v36 }
  0x8f   :  { %v338_v40 = vpop.eup %337  ;;  %347 = vtanh.f32 %v78_v37  ;;  %v101_v59 = vpop.permute.xlu0 %100 }
  0x90   :  { %v340_v42 = vpop.eup %339  ;;  %349 = vtanh.f32 %v76_v39  ;;  %v97_v53 = vpop.permute.xlu1 %96 }
  0x91   :  { %148 = vmatprep.subr.mxu0 %v340_v42  ;;  %310 = vmatprep.subr.mxu1 %v340_v42  ;;  %351 = vtanh.f32 %v75_v41  ;;  %v397_v42 = vmov 1966171168  }
  0x92   :  { %149 = vmatpush1.msra.mxu0 %v338_v40  ;;  %314 = vmatpush1.msra.mxu1 %v338_v40 }
  0x94   :  { %v105_v54 = vpop.permute.xlu1 %104  ;;  %v223_v13 = vpop.permute.xlu0 %222 }
  0x96   :  { %v342_v43 = vpop.eup %341 }
  0x97   :  { %v344_v44 = vpop.eup %343 }
  0x98   :  { %150 = vmatprep.subr.mxu0 %v344_v44  ;;  %311 = vmatprep.subr.mxu1 %v344_v44  ;;  %v109_v62 = vpop.permute.xlu1 %108  ;;  %v235_v23 = vpop.permute.xlu0 %234 }
  0x99   :  { %151 = vmatpush1.msra.mxu0 %v342_v43  ;;  %315 = vmatpush1.msra.mxu1 %v342_v43  ;;  %v273_v43 = vunpack.c.l.s4 %v397_v42 }
  0x9b   :  { %v346_v45 = vpop.eup %345 }
  0x9c   :  { %v348_v46 = vpop.eup %347 }
  0x9d   :  { %152 = vmatprep.subr.mxu0 %v348_v46  ;;  %312 = vmatprep.subr.mxu1 %v348_v46  ;;  %v350_v47 = vpop.eup %349  ;;  %v227_v9 = vpop.permute.xlu1 %226 }
  0x9e   :  { %153 = vmatpush1.msra.mxu0 %v346_v45  ;;  %316 = vmatpush1.msra.mxu1 %v346_v45  ;;  %v352_v50 = vpop.eup %351 }
  0x9f   :  { %154 = vmatprep.subr.mxu0 %v350_v47  ;;  %313 = vmatprep.subr.mxu1 %v350_v47 }
  0xa0   :  { %155 = vmatpush1.msra.mxu0 %v352_v50  ;;  %317 = vmatpush1.msra.mxu1 %v352_v50 }
  0xa1   :  { %306 = vmatmul.mubr.msk.f32.vlgmr.msra.gmra.mxu0 %vm111_vm0, %v91_v48  ;;  %308 = vmatmul.mubr.msk.f32.vlgmr.msra.gmra.mxu1 %vm111_vm0, %v93_v49  ;;  %v231_v18 = vpop.permute.xlu1 %230  ;;  %v274_v48 = vunpack.c.0.s8 %v273_v43 }
  0xa2   :  { %194 = vmatprep.mubr.f32.mxu0 %v393_v6  ;;  %206 = vmatprep.mubr.f32.mxu1 %v393_v6 }
  0xa5   :  { %307 = vmatmul.mubr.msk.f32.gmra.mxu0 %vm111_vm0, %v92_v51  ;;  %309 = vmatmul.mubr.msk.f32.gmra.mxu1 %vm111_vm0, %v94_v52 }
  0xa6   :  { %v265_v51 = vpop.permute.xlu1 %264 }
 0x161   :  { %v190_v55 = vpop.f32.mrf.mxu0  ;;  %v202_v56 = vpop.f32.mrf.mxu1 }
 0x162   :  { %v191_v57 = vadd.f32 %v190_v55, %v97_v53  ;;  %v203_v58 = vadd.f32 %v202_v56, %v105_v54 }
 0x163   :  { %v192_v60 = vpop.f32.mrf.mxu0  ;;  %v204_v61 = vpop.f32.mrf.mxu1 }
 0x164   :  { %353 = vtanh.f32 %v191_v57  ;;  %v193_v63 = vadd.f32 %v192_v60, %v97_v53  ;;  %v205_v0 = vadd.f32 %v204_v61, %v105_v54  ;;  %v277_v53 = vsub.s32 %v274_v48, %v434_v11 }
 0x165   :  { %355 = vtanh.f32 %v203_v58  ;;  %v196_v1 = vpop.f32.mrf.mxu0  ;;  %v208_v2 = vpop.f32.mrf.mxu1 }
 0x166   :  { %357 = vtanh.f32 %v193_v63  ;;  %v197_v3 = vadd.f32 %v196_v1, %v101_v59  ;;  %v209_v4 = vadd.f32 %v208_v2, %v109_v62 }
 0x167   :  { %359 = vtanh.f32 %v205_v0  ;;  %v198_v5 = vpop.f32.mrf.mxu0  ;;  %v210_v6 = vpop.f32.mrf.mxu1 }
 0x168   :  { %361 = vtanh.f32 %v197_v3  ;;  %v199_v7 = vadd.f32 %v198_v5, %v101_v59  ;;  %v211_v8 = vadd.f32 %v210_v6, %v109_v62 }
 0x169   :  { %363 = vtanh.f32 %v209_v4 }
 0x16a   :  { %365 = vtanh.f32 %v199_v7 }
 0x16b   :  { %367 = vtanh.f32 %v211_v8 }
 0x171   :  { %v354_v12 = vpop.eup %353 }
 0x172   :  { %v356_v14 = vpop.eup %355  ;;  %v237_v21 = vmul.f32 %v354_v12, %v223_v13 }
 0x173   :  { %v358_v15 = vpop.eup %357  ;;  %v241_v27 = vmul.f32 %v356_v14, %v231_v18 }
 0x174   :  { %v360_v16 = vpop.eup %359  ;;  %v238_v25 = vmul.f32 %v358_v15, %v223_v13 }
 0x175   :  { %v362_v17 = vpop.eup %361  ;;  %v242_v30 = vmul.f32 %v360_v16, %v231_v18 }
 0x176   :  { %v364_v19 = vpop.eup %363  ;;  %v239_v20 = vmul.f32 %v362_v17, %v227_v9 }
 0x177   :  { %v366_v22 = vpop.eup %365  ;;  %v243_v32 = vmul.f32 %v364_v19, %v235_v23 }
 0x178   :  { %v240_v24 = vmul.f32 %v366_v22, %v227_v9  ;;  %v245_v26 = vadd.f32 %v239_v20, %v237_v21  ;;  %v368_v28 = vpop.eup %367 }
 0x179   :  { %v244_v34 = vmul.f32 %v368_v28, %v235_v23 }
 0x17a   :  { %v254_v29 = vadd.f32 %v240_v24, %v238_v25  ;;  %v246_v31 = vadd.f32 %v245_v26, %v241_v27 }
 0x17c   :  { %v255_v33 = vadd.f32 %v254_v29, %v242_v30  ;;  %v247_v35 = vadd.f32 %v246_v31, %v243_v32 }
 0x17e   :  { %v248_v36 = vrot.slane %v247_v35, 4  ;;  %v256_v37 = vadd.f32 %v255_v33, %v244_v34 }
 0x180   :  { %v249_v38 = vadd.f32 %v248_v36, %v247_v35  ;;  %v257_v39 = vrot.slane %v256_v37, 4 }
 0x182   :  { %v258_v40 = vadd.f32 %v257_v39, %v256_v37  ;;  %v250_v41 = vrot.slane %v249_v38, 2 }
 0x184   :  { %v251_v44 = vadd.f32 %v250_v41, %v249_v38  ;;  %v259_v45 = vrot.slane %v258_v40, 2 }
 0x186   :  { %v252_v46 = vrot.slane %v251_v44, 1  ;;  %v260_v47 = vadd.f32 %v259_v45, %v258_v40 }
 0x188   :  { %v253_v49 = vadd.f32 %v252_v46, %v251_v44  ;;  %v261_v50 = vrot.slane %v260_v47, 1 }
 0x18a   :  { %v262_v52 = vadd.f32 %v261_v50, %v260_v47  ;;  %v267_v54 = vadd.f32 %v265_v51, %v253_v49 }
 0x18c   :  { %v268_v55 = vadd.f32 %v265_v51, %v262_v52 }
 0x18e   :  { %v271_v56 = vcombine.low %v267_v54, %v268_v55 }
 0x190   :  { %v278_v57 = vrot.slane %v271_v56, %v277_v53 }
 0x192   :  { %v285_v58 = vrot.slane %v278_v57, %v277_v53 }
 0x194   :  { %291 = vst.msk [vmem:[#allocation2] sm:$0x3] %vm289_vm1, %v285_v58 }
 0x195   :  { %380 = shalt.err (!%p377_p4)
}
 0x196   :  { %301 = dma.vmem_to_hbm [thread:$0]  %s299_s28, 32, %s463_s3, [#allocation3]  }
 0x197   :  { %389 = dma.done.wait [#allocation3], 32  }
 0x198   :  { %390 = vsyncadd [#allocation3], 4294967264 }
 0x199   :  { %305 = vsyncpa [#allocation3], 1 }

</bundles_post_ra>
